<compile_context>
chip_gen: v6e
topology: v6e:2x2x1
jax: 0.10.0
libtpu: 0.0.40
codegen_flags: <defaults>
</compile_context>

<pallas_src>
import jax
import jax.numpy as jnp
from jax.experimental import pallas as pl
from jax.experimental.pallas import tpu as pltpu


def quat_pred_kernel(x_ref, w_ref, s_ref, b_ref, o_ref):
    # x_ref: (TB, 128)  two samples per row (lanes 0:64 / 64:128), native dtype
    # w_ref: (8, 128)   block-diagonal [[W, 0], [0, W]], float32
    # s_ref: (8, 8)     block-diagonal ones selector for grouped sum-of-squares
    # b_ref: (8, 1)     (linear bias + [1,0,0,0]) stacked twice
    # o_ref: (8, TB)    rows 0:4 = quats of even samples, rows 4:8 = odd samples
    x = x_ref[...].astype(jnp.float32)          # cast-on-load (free vs DMA)

    # (8, TB) = W_bd (8,128) . x^T : batch on lanes, quat components on sublanes.
    y = jax.lax.dot_general(
        w_ref[...], x,
        dimension_numbers=(((1,), (1,)), ((), ())),
        preferred_element_type=jnp.float32,
    )
    y = y + b_ref[...]                          # (8,1) broadcast over lanes

    # Per-sample sum of squares: sum rows {0..3} and {4..7} via selector matmul.
    ss = jnp.dot(s_ref[...], y * y, preferred_element_type=jnp.float32)

    # F.normalize eps: y / max(||y||, 1e-12) == y * rsqrt(max(sum(y^2), 1e-24))
    inv_norm = jax.lax.rsqrt(jnp.maximum(ss, 1e-24))
    o_ref[...] = (y * inv_norm).astype(o_ref.dtype)


def quat_pred(x, weight, bias, *, max_tile_rows=16384, core_parallel=False):
    """Forward of quatPred_org.

    x:      (B, ...) flattening to (B, 64); kept in its native dtype.
    weight: (4, 64)  PyTorch nn.Linear layout.
    bias:   (4,)
    returns (B, 4) float32 normalized quaternions.
    """
    B = x.shape[0]
    x2d = x.reshape(B, -1)                           # x.view(x.size(0), -1)
    assert x2d.shape[1] == 64, "Linear expects 64 input features"

    # Pack two samples per 128-lane row (zero-copy reshape of contiguous rows).
    if B % 2:
        x2d = jnp.pad(x2d, ((0, 1), (0, 0)))         # at most 1 pad row (odd B)
    rows = x2d.shape[0] // 2
    xp = x2d.reshape(rows, 128)

    w = weight.astype(jnp.float32)                   # (4, 64)
    z = jnp.zeros((4, 64), jnp.float32)
    w_bd = jnp.concatenate(
        [jnp.concatenate([w, z], axis=1),
         jnp.concatenate([z, w], axis=1)], axis=0)   # (8, 128)

    quat_bias = jnp.array([1.0, 0.0, 0.0, 0.0], jnp.float32)
    b_full = jnp.tile(bias.astype(jnp.float32) + quat_bias, 2).reshape(8, 1)

    grp = jnp.arange(8) // 4
    sel = (grp[:, None] == grp[None, :]).astype(jnp.float32)   # (8, 8)

    # Tile size (in packed rows): a single full block for small batches,
    # otherwise a multiple of 128 so partial tail blocks stay layout-legal.
    TB = rows if rows <= max_tile_rows else max_tile_rows
    grid = (pl.cdiv(rows, TB),)

    sem = (pltpu.CORE_PARALLEL,) if core_parallel else ("parallel",)

    bytes_accessed = int(xp.size * xp.dtype.itemsize + 8 * rows * 4 + w_bd.size * 4)
    cost = pl.CostEstimate(
        flops=int(2 * (128 + 8) * 8 * rows + 6 * 8 * rows),
        transcendentals=int(8 * rows),
        bytes_accessed=bytes_accessed,
    )

    out8 = pl.pallas_call(
        quat_pred_kernel,
        out_shape=jax.ShapeDtypeStruct((8, rows), jnp.float32),
        grid=grid,
        in_specs=[
            pl.BlockSpec((TB, 128), lambda i: (i, 0)),   # x: streams over batch
            pl.BlockSpec((8, 128), lambda i: (0, 0)),    # weight: VMEM-resident
            pl.BlockSpec((8, 8), lambda i: (0, 0)),      # selector: resident
            pl.BlockSpec((8, 1), lambda i: (0, 0)),      # fused bias: resident
        ],
        out_specs=pl.BlockSpec((8, TB), lambda i: (0, i)),   # lane-dense output
        compiler_params=pltpu.CompilerParams(
            dimension_semantics=sem,
            vmem_limit_bytes=32 * 1024 * 1024,
        ),
        cost_estimate=cost,
    )(xp, w_bd, sel, b_full)

    # (8, rows) -> (B, 4): rows 0:4 are even samples, rows 4:8 are odd samples.
    quat = out8.reshape(2, 4, rows).transpose(2, 0, 1).reshape(2 * rows, 4)
    return quat[:B]


def _reference(x, weight, bias):
    y = x.reshape(x.shape[0], -1).astype(jnp.float32) @ weight.T + bias
    y = y + jnp.array([1.0, 0.0, 0.0, 0.0], jnp.float32)
    n = jnp.maximum(jnp.sqrt(jnp.sum(y * y, axis=1, keepdims=True)), 1e-12)
    return y / n


if __name__ == "__main__":
    key = jax.random.PRNGKey(0)
    k_x, k_w, k_x2 = jax.random.split(key, 3)

    # Deterministic parameter init mirroring the module's __init__:
    #   weight ~ N(0, 0.02), bias = 0
    weight = 0.02 * jax.random.normal(k_w, (4, 64), dtype=jnp.float32)
    bias = jnp.zeros((4,), dtype=jnp.float32)

    # Main check: small even batch (flattens to 64 features per sample).
    batch = 16
    x = jax.random.normal(k_x, (batch, 64), dtype=jnp.float32)
    out = jax.block_until_ready(quat_pred(x, weight, bias))
    ref = _reference(x, weight, bias)
    assert out.shape == (batch, 4)
    assert jnp.allclose(out, ref, atol=1e-5), "mismatch vs reference (even batch)"

    # Secondary check: odd batch exercises the pair-packing pad + slice path.
    batch2 = 7
    x2 = jax.random.normal(k_x2, (batch2, 64), dtype=jnp.float32)
    out2 = jax.block_until_ready(quat_pred(x2, weight, bias))
    ref2 = _reference(x2, weight, bias)
    assert out2.shape == (batch2, 4)
    assert jnp.allclose(out2, ref2, atol=1e-5), "mismatch vs reference (odd batch)"

    print("KERNEL_OK")
</pallas_src>

<mosaic_0001>
module attributes {stable_mosaic.version = 11 : i64} {
  func.func @quat_pred_kernel(%arg0: i32, %arg1: memref<8x128xf32, #tpu.memory_space<vmem>>, %arg2: memref<8x128xf32, #tpu.memory_space<vmem>>, %arg3: memref<8x8xf32, #tpu.memory_space<vmem>>, %arg4: memref<8x1xf32, #tpu.memory_space<vmem>>, %arg5: memref<8x8xf32, #tpu.memory_space<vmem>>) attributes {dimension_semantics = [#tpu.dimension_semantics<parallel>], iteration_bounds = array<i64: 1>, scalar_prefetch = 0 : i64, scratch_operands = 0 : i64, tpu.core_type = #tpu.core_type<tc>, window_params = [{transform_indices = @transform_0, window_bounds = array<i64: 8, 128>}, {pipeline_mode = #tpu.pipeline_mode<synchronous>, transform_indices = @transform_1, window_bounds = array<i64: 8, 128>}, {pipeline_mode = #tpu.pipeline_mode<synchronous>, transform_indices = @transform_2, window_bounds = array<i64: 8, 8>}, {pipeline_mode = #tpu.pipeline_mode<synchronous>, transform_indices = @transform_3, window_bounds = array<i64: 8, 1>}, {transform_indices = @transform_4, window_bounds = array<i64: 8, 8>}]} {
    %c0 = arith.constant 0 : index
    %c0_0 = arith.constant 0 : index
    %0 = vector.load %arg1[%c0, %c0_0] : memref<8x128xf32, #tpu.memory_space<vmem>>, vector<8x128xf32>
    %c0_1 = arith.constant 0 : index
    %c0_2 = arith.constant 0 : index
    %1 = vector.load %arg2[%c0_1, %c0_2] : memref<8x128xf32, #tpu.memory_space<vmem>>, vector<8x128xf32>
    %cst = arith.constant dense<0.000000e+00> : vector<8x8xf32>
    %2 = tpu.matmul %1, %0, %cst {dimension_numbers = #tpu.dot_dimension_numbers<[1], [1], [0], [0], [0, 0, 1, 0], [], []>} : vector<8x128xf32>, vector<8x128xf32>, vector<8x8xf32> -> vector<8x8xf32>
    %c0_3 = arith.constant 0 : index
    %c0_4 = arith.constant 0 : index
    %3 = vector.load %arg4[%c0_3, %c0_4] : memref<8x1xf32, #tpu.memory_space<vmem>>, vector<8x1xf32>
    %4 = vector.broadcast %3 : vector<8x1xf32> to vector<8x8xf32>
    %5 = arith.addf %2, %4 : vector<8x8xf32>
    %c0_5 = arith.constant 0 : index
    %c0_6 = arith.constant 0 : index
    %6 = vector.load %arg3[%c0_5, %c0_6] : memref<8x8xf32, #tpu.memory_space<vmem>>, vector<8x8xf32>
    %7 = arith.mulf %5, %5 : vector<8x8xf32>
    %cst_7 = arith.constant dense<0.000000e+00> : vector<8x8xf32>
    %8 = tpu.matmul %6, %7, %cst_7 {dimension_numbers = #tpu.dot_dimension_numbers<[1], [0], [0], [1], [0, 0, 1, 1], [], []>} : vector<8x8xf32>, vector<8x8xf32>, vector<8x8xf32> -> vector<8x8xf32>
    %cst_8 = arith.constant 1.000000e-24 : f32
    %9 = vector.broadcast %cst_8 : f32 to vector<8x8xf32>
    %10 = arith.maximumf %8, %9 : vector<8x8xf32>
    %11 = math.rsqrt %10 : vector<8x8xf32>
    %12 = arith.mulf %5, %11 : vector<8x8xf32>
    %c0_9 = arith.constant 0 : index
    %c0_10 = arith.constant 0 : index
    %13 = vector.load %arg5[%c0_9, %c0_10] : memref<8x8xf32, #tpu.memory_space<vmem>>, vector<8x8xf32>
    tpu.vector_store %arg5[%c0_9, %c0_10], %12 {strides = array<i32>} : memref<8x8xf32, #tpu.memory_space<vmem>>, vector<8x8xf32>,
    return
  }
  func.func @transform_0(%arg0: i32) -> (i32, i32) {
    %c0_i32 = arith.constant 0 : i32
    %c0_i32_0 = arith.constant 0 : i32
    return %arg0, %c0_i32 : i32, i32
  }
  func.func @transform_1(%arg0: i32) -> (i32, i32) {
    %c0_i32 = arith.constant 0 : i32
    %c0_i32_0 = arith.constant 0 : i32
    %c0_i32_1 = arith.constant 0 : i32
    return %c0_i32, %c0_i32_0 : i32, i32
  }
  func.func @transform_2(%arg0: i32) -> (i32, i32) {
    %c0_i32 = arith.constant 0 : i32
    %c0_i32_0 = arith.constant 0 : i32
    %c0_i32_1 = arith.constant 0 : i32
    return %c0_i32, %c0_i32_0 : i32, i32
  }
  func.func @transform_3(%arg0: i32) -> (i32, i32) {
    %c0_i32 = arith.constant 0 : i32
    %c0_i32_0 = arith.constant 0 : i32
    %c0_i32_1 = arith.constant 0 : i32
    return %c0_i32, %c0_i32_0 : i32, i32
  }
  func.func @transform_4(%arg0: i32) -> (i32, i32) {
    %c0_i32 = arith.constant 0 : i32
    %c0_i32_0 = arith.constant 0 : i32
    return %c0_i32, %arg0 : i32, i32
  }
}

</mosaic_0001>

<bundles_post_ra>
// kernel: tpu_custom_call.1
= control target key start
LH: loop header
LB: loop body
LE: loop exit
PB: predicated region body
PF: predicated region fallthrough
CT: control target
= control target key end

     0   :  { %9 = vsyncpa [#allocation3], 0  ;;  %s352_s0 = inlined_call_operand.vmem [shape: f32[8,128], index: 0, kind: input, shape index: {}]   ;;  %s353_s1 = inlined_call_operand.hbm [shape: f32[8,128], index: 1, kind: input, shape index: {}]   ;;  %s354_s2 = inlined_call_operand.hbm [shape: f32[8,8], index: 2, kind: input, shape index: {}]   ;;  %s355_s3 = inlined_call_operand.vmem [shape: f32[8,1], index: 3, kind: input, shape index: {}]   ;;  %s356_s4 = inlined_call_operand.hbm [shape: f32[8,8], index: 4, kind: output, shape index: {}]  }
   0x1   :  { %10 = vsyncpa [#allocation6], 0 }
   0x2   :  { %11 = vsyncpa [#allocation4], 0  ;;  %s306_s15 = smov [#allocation2]   ;;  %s307_s17 = smov [#allocation5]  }
   0x3   :  { %s20_s16 = sshll.u32 %s306_s15, 4  ;;  %s30_s18 = sshll.u32 %s307_s17, 4  ;;  %s21_s16 = int_to_ptr.vmem [resolvable:$true] %s20_s16  ;;  %s31_s18 = int_to_ptr.vmem [resolvable:$true] %s30_s18 }
   0x4   :  { %s248_s19 = scalar_lea.vmem %s21_s16, 128  ;;  %p253_p1 = scmp.lt.s32.totalorder %s21_s16, %s21_s16 }
   0x5   :  { %p249_p0 = scmp.ne.s32.totalorder %s21_s16, %s248_s19  ;;  %p254_p2 = scmp.lt.s32.totalorder %s248_s19, %s248_s19 }
   0x7   :  { %p255_p3 = por %p254_p2, %p253_p1 }
   0x9   :  { %p256_p4 = pnand %p255_p3, %p249_p0 }
   0xb   :  { %259 = shalt.err (!%p256_p4)
}
   0xc   :  { %23 = dma.hbm_to_vmem [thread:$0]  %s353_s1, 128, %s21_s16, [#allocation3]  }
   0xd   :  { %s268_s22 = scalar_lea.vmem %s31_s18, 128  ;;  %p273_p6 = scmp.lt.s32.totalorder %s31_s18, %s31_s18 }
   0xe   :  { %p269_p5 = scmp.ne.s32.totalorder %s31_s18, %s268_s22  ;;  %p274_p7 = scmp.lt.s32.totalorder %s268_s22, %s268_s22 }
  0x10   :  { %p275_p8 = por %p274_p7, %p273_p6 }
  0x12   :  { %p276_p9 = pnand %p275_p8, %p269_p5 }
  0x14   :  { %279 = shalt.err (!%p276_p9)
}
  0x15   :  { %33 = dma.hbm_to_vmem [thread:$0]  %s354_s2, 128, %s31_s18, [#allocation6]  }
  0x16   :  { %300 = dma.done.wait [#allocation3], 128  }
  0x17   :  { %301 = vsyncadd [#allocation3], 4294967168 }
  0x18   :  { %302 = dma.done.wait [#allocation6], 128  }
  0x19   :  { %303 = vsyncadd [#allocation6], 4294967168  ;;  %v308_v0 = vmov 0.0   ;;  %vm309_vm0 = vmmov 0   ;;  %v310_v1 = vmov 0   ;;  %v42_v2 = vld [vmem:[%s352_s0] sm:$0xff] }
  0x1a   :  { %221 = vmatprep.subr.mxu0 %v308_v0  ;;  %223 = vmatprep.mubr.msk.f32.mxu0 %vm309_vm0, %v308_v0  ;;  %v44_v3 = vld [vmem:[%s355_s3] sm:$0xff]  ;;  %v120_v10 = vld [vmem:[#allocation5] sm:$0xff]  ;;  %vm122_vm1 = vcmask 64512   ;;  %s311_s0 = smov [#allocation7]  }
  0x1b   :  { %237 = vset.pattern.permute.xlu0 %v310_v1  ;;  %226 = vmatprep.subr.mxu1 %v308_v0  ;;  %v43_v4 = vld [vmem:[#allocation2] sm:$0xff]  ;;  %s206_s2 = sshll.u32 %s311_s0, 4  ;;  %s207_s2 = int_to_ptr.vmem [resolvable:$true] %s206_s2 }
  0x1c   :  { %228 = vmatprep.mubr.msk.f32.mxu1 %vm309_vm0, %v308_v0  ;;  %222 = vmatpush3.xpose.msra.mxu0 %v42_v2  ;;  %s280_s3 = scalar_lea.vmem %s207_s2, 128  ;;  %p285_p11 = scmp.lt.s32.totalorder %s207_s2, %s207_s2 }
  0x1d   :  { %47 = vperm.xlu0 %237, %v44_v3   ;;  %p281_p10 = scmp.ne.s32.totalorder %s207_s2, %s280_s3  ;;  %p286_p12 = scmp.lt.s32.totalorder %s280_s3, %s280_s3 }
  0x1f   :  { %224 = vmatmul.mubr.f32.vlgmr.msra.gmra.mxu0 %v43_v4  ;;  %p287_p13 = por %p286_p12, %p285_p11 }
  0x21   :  { %p288_p0 = pnand %p287_p13, %p281_p10 }
  0x98   :  { %v48_v5 = vpop.permute.xlu0 %47 }
  0xdf   :  { %v116_v6 = vpop.f32.mrf.mxu0 }
  0xe0   :  { %v117_v7 = vadd.f32 %v116_v6, %v48_v5 }
  0xe1   :  { %v225_v8 = vpop.f32.mrf.mxu0 }
  0xe2   :  { %v121_v9 = vmul.f32 %v117_v7, %v117_v7 }
  0xe4   :  { %227 = vmatpush3.msra.mxu1 %v121_v9 }
  0xe5   :  { %229 = vmatmul.mubr.msk.f32.vlgmr.msra.gmra.mxu1 %vm122_vm1, %v120_v10 }
 0x1a5   :  { %v192_v11 = vpop.f32.mrf.mxu1 }
 0x1a6   :  { %v196_v12 = vmax.f32 %v192_v11, 1e-24 }
 0x1a7   :  { %v230_v13 = vpop.f32.mrf.mxu1 }
 0x1a8   :  { %238 = vrsqrt.f32 %v196_v12 }
 0x1b5   :  { %v239_v14 = vpop.eup %238 }
 0x1b6   :  { %v198_v15 = vmul.f32 %v239_v14, %v117_v7 }
 0x1b8   :  { %199 = vst.msk [vmem:[#allocation7] sm:$0xff] %vm122_vm1, %v198_v15 }
 0x1b9   :  { %291 = shalt.err (!%p288_p0)
}
 0x1ba   :  { %209 = dma.vmem_to_hbm [thread:$0]  %s207_s2, 128, %s356_s4, [#allocation4]  }
 0x1bb   :  { %304 = dma.done.wait [#allocation4], 128  }
 0x1bc   :  { %305 = vsyncadd [#allocation4], 4294967168 }
 0x1bd   :  { %213 = vsyncpa [#allocation3], 1 }
 0x1be   :  { %214 = vsyncpa [#allocation6], 1 }
 0x1bf   :  { %215 = vsyncpa [#allocation4], 1 }

</bundles_post_ra>
